<compile_context>
chip_gen: v5e
topology: v5e:2x2
jax: 0.10.0
libtpu: 0.0.40
codegen_flags: <defaults>
</compile_context>

<pallas_src>
import math
import functools

import jax
import jax.numpy as jnp
from jax import lax
from jax.experimental import pallas as pl
from jax.experimental.pallas import tpu as pltpu


_GELU_C1 = math.sqrt(2.0 / math.pi)
_GELU_C2 = 0.044715 * _GELU_C1


def _cdiv(a, b):
    return -(-a // b)


def _round_up(a, m):
    return _cdiv(a, m) * m


def _ff_kernel(x_ref, lnw_ref, wcat_ref, wo_ref, o_ref, acc_ref, normed_ref,
               *, eps, tf, resident):
    """One (tm, D) row tile x one tf-slice of d_ff.

    grid = (n_m, n_f); axis 1 (d_ff) is the down-projection reduction axis.
    acc_ref is seeded with the residual x at j == 0 and written at j == n_f-1.
    In resident mode the weight refs hold ALL n_f chunks (DMA'd from HBM once
    per core thanks to constant index maps); otherwise only the current chunk.
    """
    j = pl.program_id(1)
    nf = pl.num_programs(1)

    # --- RMSNorm (SparseT5LayerNorm) + residual seed, once per row tile -----
    @pl.when(j == 0)
    def _init():
        x = x_ref[...].astype(jnp.float32)
        var = jnp.mean(x * x, axis=-1, keepdims=True)
        normed = (x * lax.rsqrt(var + eps)) * lnw_ref[...].astype(jnp.float32)
        normed_ref[...] = normed.astype(normed_ref.dtype)   # bf16 MXU operand
        acc_ref[...] = x                       # residual seeds the accumulator

    normed = normed_ref[...]                   # (tm, D)

    jblk = j if resident else 0
    w_up = wcat_ref[jblk]                      # (D, 2*tf)  = [wi0^T | wi1^T*mask]
    w_dn = wo_ref[jblk]                        # (tf, D)    = wo^T chunk

    # --- fused up-projection for this tf slice (single MXU pass) ------------
    h = jnp.dot(normed, w_up, preferred_element_type=jnp.float32)  # (tm, 2*tf)
    h_gate = h[:, :tf]
    h_lin = h[:, tf:]

    # gelu_new with folded constants:
    #   0.5*x*(1 + tanh(c*(x + 0.044715*x^3))) == x*(0.5 + 0.5*tanh(x*(C1 + C2*x*x)))
    t = jnp.tanh(h_gate * (_GELU_C1 + _GELU_C2 * (h_gate * h_gate)))
    hprod = (h_gate * (0.5 + 0.5 * t) * h_lin).astype(w_dn.dtype)  # (tm, tf) bf16

    # --- down-projection partial sum over this tf slice ----------------------
    acc_ref[...] += jnp.dot(hprod, w_dn, preferred_element_type=jnp.float32)

    # --- writeback (residual already folded into acc) ------------------------
    @pl.when(j == nf - 1)
    def _finalize():
        o_ref[...] = acc_ref[...].astype(o_ref.dtype)


def pack_ff_weights(wi0, wi1, wo, layer_neuron_mask=None, *,
                    d_ff_tile=512, compute_dtype=jnp.bfloat16):
    """One-time weight packing — hoist out of the per-call path and cache.

    wi0, wi1: [d_ff, d_model]  (PyTorch nn.Linear weight layout)
    wo:       [d_model, d_ff]
    Returns packed dict:
      wcat: (n_f, d_model, 2*tf)  chunk j = [wi0^T | wi1^T*mask] cols j*tf:(j+1)*tf
      wo:   (n_f, tf, d_model)    chunk j = wo^T rows j*tf:(j+1)*tf
    d_ff is zero-padded to n_f*tf; padded neurons contribute exactly zero.
    """
    Fff, D = wi0.shape
    n_f = max(1, _cdiv(Fff, d_ff_tile))
    tf = _round_up(_cdiv(Fff, n_f), 128)
    n_f = _cdiv(Fff, tf)
    F_pad = n_f * tf

    wi0_t = wi0.T.astype(jnp.float32)                         # (D, F)
    wi1_t = wi1.T.astype(jnp.float32)                         # (D, F)
    if layer_neuron_mask is not None:
        # mask multiplies gelu(x@wi0^T) * (x@wi1^T) elementwise over d_ff;
        # scaling wi1^T columns by the mask is equivalent.
        mask = jnp.asarray(layer_neuron_mask, jnp.float32).reshape(1, Fff)
        wi1_t = wi1_t * mask
    wo_f = wo.astype(jnp.float32)                             # (D, F)
    if F_pad != Fff:
        pad = F_pad - Fff
        wi0_t = jnp.pad(wi0_t, ((0, 0), (0, pad)))
        wi1_t = jnp.pad(wi1_t, ((0, 0), (0, pad)))
        wo_f = jnp.pad(wo_f, ((0, 0), (0, pad)))

    wcat = jnp.concatenate(
        [wi0_t.reshape(D, n_f, tf), wi1_t.reshape(D, n_f, tf)], axis=2)
    wcat = jnp.transpose(wcat, (1, 0, 2)).astype(compute_dtype)   # (n_f, D, 2*tf)
    wo_t = wo_f.T.reshape(n_f, tf, D).astype(compute_dtype)       # (n_f, tf, D)
    return {"wcat": wcat, "wo": wo_t, "tf": tf, "n_f": n_f,
            "d_model": D, "d_ff": Fff}


def _vmem_budget_bytes():
    """Generation-aware usable-VMEM cap (leave headroom below physical)."""
    try:
        phys = int(pltpu.get_tpu_info().vmem_capacity_bytes)
    except Exception:
        phys = 64 << 20                     # conservative (v7x-sized) fallback
    if phys > (96 << 20):                   # v5e / v6e: 128 MiB physical
        return phys - (24 << 20)
    return phys - (8 << 20)                 # v7x: 64 MiB physical


def sparse_t5_layer_ff_packed(hidden_states, ln_weight, packed, *,
                              eps=1e-6, row_tile=512):
    """hidden_states: [B, S, d_model]; packed = pack_ff_weights(...)."""
    B, S, D = hidden_states.shape
    assert D == packed["d_model"]
    M = B * S
    tf, n_f = packed["tf"], packed["n_f"]
    wcat, wo_t = packed["wcat"], packed["wo"]
    compute_dtype = wcat.dtype

    # --- row tiling: pad M to n_m*tm; keep >= 2 row tiles so both v7x cores
    # get work on the "parallel" axis.
    n_m = max(1, _cdiv(M, row_tile))
    if n_m < 2 and M > 8:
        n_m = 2
    tm = _round_up(_cdiv(M, n_m), 8)
    n_m = _cdiv(M, tm)
    M_pad = n_m * tm

    x2d = hidden_states.reshape(M, D)
    if M_pad != M:
        x2d = jnp.pad(x2d, ((0, M_pad - M), (0, 0)))
    lnw = jnp.asarray(ln_weight).reshape(1, D)

    # --- residency decision: keep the whole packed weight set in VMEM when it
    # fits (2x for Pallas double-buffering); otherwise stream tf slices.
    wb = jnp.dtype(compute_dtype).itemsize
    xb = jnp.dtype(x2d.dtype).itemsize
    ob = jnp.dtype(hidden_states.dtype).itemsize
    lb = jnp.dtype(lnw.dtype).itemsize
    weight_bytes = (wcat.size + wo_t.size) * wb
    tile_bytes = (2 * tm * D * xb + 2 * tm * D * ob      # x / out tiles (2-buffered)
                  + tm * D * 4 + tm * D * wb             # acc (f32) + normed scratch
                  + 2 * D * lb)
    temp_bytes = 16 * tm * tf                             # (tm, 2*tf) f32 temporaries
    vmem_cap = _vmem_budget_bytes()
    resident = (2 * weight_bytes + tile_bytes + temp_bytes) <= vmem_cap

    if resident:
        # Constant index maps -> the pipeline copies each weight from HBM once
        # per core and keeps it VMEM-resident across all grid steps.
        wcat_spec = pl.BlockSpec((n_f, D, 2 * tf), lambda i, j: (0, 0, 0))
        wo_spec = pl.BlockSpec((n_f, tf, D), lambda i, j: (0, 0, 0))
    else:
        wcat_spec = pl.BlockSpec((1, D, 2 * tf), lambda i, j: (j, 0, 0))
        wo_spec = pl.BlockSpec((1, tf, D), lambda i, j: (j, 0, 0))

    kernel = functools.partial(_ff_kernel, eps=float(eps), tf=tf,
                               resident=resident)

    out2d = pl.pallas_call(
        kernel,
        out_shape=jax.ShapeDtypeStruct((M_pad, D), hidden_states.dtype),
        grid_spec=pltpu.PrefetchScalarGridSpec(
            num_scalar_prefetch=0,
            grid=(n_m, n_f),                                # d_ff reduction last
            in_specs=[
                pl.BlockSpec((tm, D), lambda i, j: (i, 0)),   # x rows
                pl.BlockSpec((1, D), lambda i, j: (0, 0)),    # RMSNorm weight
                wcat_spec,                                     # [wi0 | wi1*mask]
                wo_spec,                                       # wo^T
            ],
            out_specs=pl.BlockSpec((tm, D), lambda i, j: (i, 0)),
            scratch_shapes=[
                pltpu.VMEM((tm, D), jnp.float32),     # residual + down-proj acc
                pltpu.VMEM((tm, D), compute_dtype),   # cached RMSNorm output
            ],
        ),
        compiler_params=pltpu.CompilerParams(
            dimension_semantics=("parallel", "arbitrary"),
            vmem_limit_bytes=int(max(vmem_cap, 32 << 20)),
        ),
    )(x2d, lnw, wcat, wo_t)

    if M_pad != M:
        out2d = out2d[:M]
    return out2d.reshape(B, S, D)


def sparse_t5_layer_ff(hidden_states, ln_weight, wi0, wi1, wo,
                       layer_neuron_mask=None, eps=1e-6,
                       d_ff_tile=512, row_tile=512,
                       compute_dtype=jnp.bfloat16):
    """Convenience wrapper (packs weights per call). For production, call
    pack_ff_weights() once per layer and reuse sparse_t5_layer_ff_packed()."""
    packed = pack_ff_weights(wi0, wi1, wo, layer_neuron_mask=layer_neuron_mask,
                             d_ff_tile=d_ff_tile, compute_dtype=compute_dtype)
    return sparse_t5_layer_ff_packed(hidden_states, ln_weight, packed,
                                     eps=eps, row_tile=row_tile)


def reference(hidden_states, ln_weight, wi0, wi1, wo, layer_neuron_mask=None,
              eps=1e-6, compute_dtype=jnp.float32):
    """Pure-JAX reference; with compute_dtype=bf16 it mirrors the kernel's casts."""
    x = hidden_states.astype(jnp.float32)
    var = jnp.mean(x * x, axis=-1, keepdims=True)
    normed = ln_weight.astype(jnp.float32) * (x * jax.lax.rsqrt(var + eps))
    normed_c = normed.astype(compute_dtype)
    wi0_t = wi0.T.astype(jnp.float32)
    wi1_t = wi1.T.astype(jnp.float32)
    if layer_neuron_mask is not None:
        wi1_t = wi1_t * jnp.asarray(layer_neuron_mask, jnp.float32).reshape(1, -1)
    hg = jnp.dot(normed_c, wi0_t.astype(compute_dtype),
                 preferred_element_type=jnp.float32)
    hl = jnp.dot(normed_c, wi1_t.astype(compute_dtype),
                 preferred_element_type=jnp.float32)
    c = math.sqrt(2.0 / math.pi)
    gelu = 0.5 * hg * (1.0 + jnp.tanh(c * (hg + 0.044715 * hg * hg * hg)))
    h = (gelu * hl).astype(compute_dtype)
    ff = jnp.dot(h, wo.T.astype(compute_dtype), preferred_element_type=jnp.float32)
    return (x + ff).astype(hidden_states.dtype)


if __name__ == "__main__":
    # Small, module-consistent shapes: batch=2, seq=8, d_model=32, d_ff=64
    B, S, D, Fff = 2, 8, 32, 64
    key = jax.random.PRNGKey(0)
    k1, k2, k3, k4, k5, k6 = jax.random.split(key, 6)

    hidden_states = jax.random.normal(k1, (B, S, D), dtype=jnp.float32)
    ln_weight = jnp.ones((D,), jnp.float32) + 0.01 * jax.random.normal(k2, (D,))
    wi0 = jax.random.normal(k3, (Fff, D), dtype=jnp.float32) / math.sqrt(D)
    wi1 = jax.random.normal(k4, (Fff, D), dtype=jnp.float32) / math.sqrt(D)
    wo = jax.random.normal(k5, (D, Fff), dtype=jnp.float32) / math.sqrt(Fff)
    layer_neuron_mask = (jax.random.uniform(k6, (Fff,)) > 0.2).astype(jnp.float32)

    # Pack weights once (hoisted / cacheable), then run the kernel.
    packed = pack_ff_weights(wi0, wi1, wo, layer_neuron_mask=layer_neuron_mask)
    out = sparse_t5_layer_ff_packed(hidden_states, ln_weight, packed)
    out = jax.block_until_ready(out)
    assert out.shape == (B, S, D)

    # Reference with the same bf16 MXU-operand casting as the kernel.
    ref_bf16 = reference(hidden_states, ln_weight, wi0, wi1, wo,
                         layer_neuron_mask=layer_neuron_mask,
                         compute_dtype=jnp.bfloat16)
    assert jnp.allclose(out, ref_bf16, atol=2e-3, rtol=2e-3), \
        float(jnp.max(jnp.abs(out - ref_bf16)))

    # Looser semantic check against the pure-f32 module math.
    ref_f32 = reference(hidden_states, ln_weight, wi0, wi1, wo,
                        layer_neuron_mask=layer_neuron_mask,
                        compute_dtype=jnp.float32)
    assert jnp.allclose(out, ref_f32, atol=5e-2, rtol=5e-2), \
        float(jnp.max(jnp.abs(out - ref_f32)))

    print("KERNEL_OK")
</pallas_src>

<mosaic_0001>
module attributes {stable_mosaic.version = 11 : i64} {
  func.func @_ff_kernel(%arg0: i32, %arg1: i32, %arg2: memref<8x32xf32, #tpu.memory_space<vmem>>, %arg3: memref<1x32xf32, #tpu.memory_space<vmem>>, %arg4: memref<1x32x256xbf16, #tpu.memory_space<vmem>>, %arg5: memref<1x128x32xbf16, #tpu.memory_space<vmem>>, %arg6: memref<8x32xf32, #tpu.memory_space<vmem>>, %arg7: memref<8x32xf32, #tpu.memory_space<vmem>>, %arg8: memref<8x32xbf16, #tpu.memory_space<vmem>>) attributes {dimension_semantics = [#tpu.dimension_semantics<parallel>, #tpu.dimension_semantics<arbitrary>], iteration_bounds = array<i64: 2, 1>, scalar_prefetch = 0 : i64, scratch_operands = 2 : i64, tpu.core_type = #tpu.core_type<tc>, window_params = [{transform_indices = @transform_0, window_bounds = array<i64: 8, 32>}, {pipeline_mode = #tpu.pipeline_mode<synchronous>, transform_indices = @transform_1, window_bounds = array<i64: 1, 32>}, {pipeline_mode = #tpu.pipeline_mode<synchronous>, transform_indices = @transform_2, window_bounds = array<i64: 1, 32, 256>}, {pipeline_mode = #tpu.pipeline_mode<synchronous>, transform_indices = @transform_3, window_bounds = array<i64: 1, 128, 32>}, {transform_indices = @transform_4, window_bounds = array<i64: 8, 32>}]} {
    %c0_i32 = arith.constant 0 : i32
    %0 = arith.cmpi eq, %arg1, %c0_i32 : i32
    %1 = arith.extui %0 : i1 to i32
    %c0_i32_0 = arith.constant 0 : i32
    %2 = arith.cmpi ne, %1, %c0_i32_0 : i32
    scf.if %2 {
      %c0_17 = arith.constant 0 : index
      %c0_18 = arith.constant 0 : index
      %34 = vector.load %arg2[%c0_17, %c0_18] : memref<8x32xf32, #tpu.memory_space<vmem>>, vector<8x32xf32>
      %35 = arith.mulf %34, %34 : vector<8x32xf32>
      %cst_19 = arith.constant dense<0.000000e+00> : vector<8xf32>
      %36 = vector.multi_reduction <add>, %35, %cst_19 [1] : vector<8x32xf32> to vector<8xf32>
      %37 = vector.shape_cast %36 : vector<8xf32> to vector<8x1xf32>
      %cst_20 = arith.constant 3.200000e+01 : f32
      %38 = vector.broadcast %cst_20 : f32 to vector<8x1xf32>
      %39 = arith.divf %37, %38 : vector<8x1xf32>
      %cst_21 = arith.constant 9.99999997E-7 : f32
      %40 = vector.broadcast %cst_21 : f32 to vector<8x1xf32>
      %41 = arith.addf %39, %40 : vector<8x1xf32>
      %42 = math.rsqrt %41 : vector<8x1xf32>
      %43 = vector.broadcast %42 : vector<8x1xf32> to vector<8x32xf32>
      %44 = arith.mulf %34, %43 : vector<8x32xf32>
      %c0_22 = arith.constant 0 : index
      %c0_23 = arith.constant 0 : index
      %45 = vector.load %arg3[%c0_22, %c0_23] : memref<1x32xf32, #tpu.memory_space<vmem>>, vector<1x32xf32>
      %46 = vector.broadcast %45 : vector<1x32xf32> to vector<8x32xf32>
      %47 = arith.mulf %44, %46 : vector<8x32xf32>
      %48 = arith.truncf %47 : vector<8x32xf32> to vector<8x32xbf16>
      %c0_24 = arith.constant 0 : index
      %c0_25 = arith.constant 0 : index
      %49 = vector.load %arg8[%c0_24, %c0_25] : memref<8x32xbf16, #tpu.memory_space<vmem>>, vector<8x32xbf16>
      tpu.vector_store %arg8[%c0_24, %c0_25], %48 {strides = array<i32>} : memref<8x32xbf16, #tpu.memory_space<vmem>>, vector<8x32xbf16>,
      %c0_26 = arith.constant 0 : index
      %c0_27 = arith.constant 0 : index
      %50 = vector.load %arg7[%c0_26, %c0_27] : memref<8x32xf32, #tpu.memory_space<vmem>>, vector<8x32xf32>
      tpu.vector_store %arg7[%c0_26, %c0_27], %34 {strides = array<i32>} : memref<8x32xf32, #tpu.memory_space<vmem>>, vector<8x32xf32>,
    } else {
    }
    %c0 = arith.constant 0 : index
    %c0_1 = arith.constant 0 : index
    %3 = vector.load %arg8[%c0, %c0_1] : memref<8x32xbf16, #tpu.memory_space<vmem>>, vector<8x32xbf16>
    %4 = arith.index_cast %arg1 : i32 to index
    %c0_2 = arith.constant 0 : index
    %c0_3 = arith.constant 0 : index
    %5 = vector.load %arg4[%4, %c0_2, %c0_3] : memref<1x32x256xbf16, #tpu.memory_space<vmem>>, vector<1x32x256xbf16>
    %6 = vector.shape_cast %5 : vector<1x32x256xbf16> to vector<32x256xbf16>
    %7 = arith.index_cast %arg1 : i32 to index
    %c0_4 = arith.constant 0 : index
    %c0_5 = arith.constant 0 : index
    %8 = vector.load %arg5[%7, %c0_4, %c0_5] : memref<1x128x32xbf16, #tpu.memory_space<vmem>>, vector<1x128x32xbf16>
    %9 = vector.shape_cast %8 : vector<1x128x32xbf16> to vector<128x32xbf16>
    %cst = arith.constant dense<0.000000e+00> : vector<8x256xf32>
    %10 = tpu.matmul %3, %6, %cst {dimension_numbers = #tpu.dot_dimension_numbers<[1], [0], [0], [1], [0, 0, 1, 1], [], []>} : vector<8x32xbf16>, vector<32x256xbf16>, vector<8x256xf32> -> vector<8x256xf32>
    %11 = vector.extract_strided_slice %10 {offsets = [0, 0], sizes = [8, 128], strides = [1, 1]} : vector<8x256xf32> to vector<8x128xf32>
    %12 = vector.extract_strided_slice %10 {offsets = [0, 128], sizes = [8, 128], strides = [1, 1]} : vector<8x256xf32> to vector<8x128xf32>
    %13 = arith.mulf %11, %11 : vector<8x128xf32>
    %cst_6 = arith.constant 0.0356774069 : f32
    %14 = vector.broadcast %cst_6 : f32 to vector<8x128xf32>
    %15 = arith.mulf %14, %13 : vector<8x128xf32>
    %cst_7 = arith.constant 0.797884583 : f32
    %16 = vector.broadcast %cst_7 : f32 to vector<8x128xf32>
    %17 = arith.addf %16, %15 : vector<8x128xf32>
    %18 = arith.mulf %11, %17 : vector<8x128xf32>
    %19 = math.tanh %18 : vector<8x128xf32>
    %cst_8 = arith.constant 5.000000e-01 : f32
    %20 = vector.broadcast %cst_8 : f32 to vector<8x128xf32>
    %21 = arith.mulf %20, %19 : vector<8x128xf32>
    %cst_9 = arith.constant 5.000000e-01 : f32
    %22 = vector.broadcast %cst_9 : f32 to vector<8x128xf32>
    %23 = arith.addf %22, %21 : vector<8x128xf32>
    %24 = arith.mulf %11, %23 : vector<8x128xf32>
    %25 = arith.mulf %24, %12 : vector<8x128xf32>
    %26 = arith.truncf %25 : vector<8x128xf32> to vector<8x128xbf16>
    %c0_10 = arith.constant 0 : index
    %c0_11 = arith.constant 0 : index
    %27 = vector.load %arg7[%c0_10, %c0_11] : memref<8x32xf32, #tpu.memory_space<vmem>>, vector<8x32xf32>
    %cst_12 = arith.constant dense<0.000000e+00> : vector<8x32xf32>
    %28 = tpu.matmul %26, %9, %cst_12 {dimension_numbers = #tpu.dot_dimension_numbers<[1], [0], [0], [1], [0, 0, 1, 1], [], []>} : vector<8x128xbf16>, vector<128x32xbf16>, vector<8x32xf32> -> vector<8x32xf32>
    %29 = arith.addf %27, %28 : vector<8x32xf32>
    %c0_13 = arith.constant 0 : index
    %c0_14 = arith.constant 0 : index
    %30 = vector.load %arg7[%c0_13, %c0_14] : memref<8x32xf32, #tpu.memory_space<vmem>>, vector<8x32xf32>
    tpu.vector_store %arg7[%c0_13, %c0_14], %29 {strides = array<i32>} : memref<8x32xf32, #tpu.memory_space<vmem>>, vector<8x32xf32>,
    %c0_i32_15 = arith.constant 0 : i32
    %31 = arith.cmpi eq, %arg1, %c0_i32_15 : i32
    %32 = arith.extui %31 : i1 to i32
    %c0_i32_16 = arith.constant 0 : i32
    %33 = arith.cmpi ne, %32, %c0_i32_16 : i32
    scf.if %33 {
      %c0_17 = arith.constant 0 : index
      %c0_18 = arith.constant 0 : index
      %34 = vector.load %arg7[%c0_17, %c0_18] : memref<8x32xf32, #tpu.memory_space<vmem>>, vector<8x32xf32>
      %c0_19 = arith.constant 0 : index
      %c0_20 = arith.constant 0 : index
      %35 = vector.load %arg6[%c0_19, %c0_20] : memref<8x32xf32, #tpu.memory_space<vmem>>, vector<8x32xf32>
      tpu.vector_store %arg6[%c0_19, %c0_20], %34 {strides = array<i32>} : memref<8x32xf32, #tpu.memory_space<vmem>>, vector<8x32xf32>,
    } else {
    }
    return
  }
  func.func @transform_0(%arg0: i32, %arg1: i32) -> (i32, i32) {
    %c0_i32 = arith.constant 0 : i32
    %c0_i32_0 = arith.constant 0 : i32
    return %arg0, %c0_i32 : i32, i32
  }
  func.func @transform_1(%arg0: i32, %arg1: i32) -> (i32, i32) {
    %c0_i32 = arith.constant 0 : i32
    %c0_i32_0 = arith.constant 0 : i32
    %c0_i32_1 = arith.constant 0 : i32
    return %c0_i32, %c0_i32_0 : i32, i32
  }
  func.func @transform_2(%arg0: i32, %arg1: i32) -> (i32, i32, i32) {
    %c0_i32 = arith.constant 0 : i32
    %c0_i32_0 = arith.constant 0 : i32
    %c0_i32_1 = arith.constant 0 : i32
    %c0_i32_2 = arith.constant 0 : i32
    return %c0_i32, %c0_i32_0, %c0_i32_1 : i32, i32, i32
  }
  func.func @transform_3(%arg0: i32, %arg1: i32) -> (i32, i32, i32) {
    %c0_i32 = arith.constant 0 : i32
    %c0_i32_0 = arith.constant 0 : i32
    %c0_i32_1 = arith.constant 0 : i32
    %c0_i32_2 = arith.constant 0 : i32
    return %c0_i32, %c0_i32_0, %c0_i32_1 : i32, i32, i32
  }
  func.func @transform_4(%arg0: i32, %arg1: i32) -> (i32, i32) {
    %c0_i32 = arith.constant 0 : i32
    %c0_i32_0 = arith.constant 0 : i32
    return %arg0, %c0_i32 : i32, i32
  }
}

</mosaic_0001>

<bundles_post_ra>
// kernel: tpu_custom_call.1
= control target key start
LH: loop header
LB: loop body
LE: loop exit
PB: predicated region body
PF: predicated region fallthrough
CT: control target
= control target key end

     0   :  { %9 = vsyncpa [#allocation5], 0  ;;  %s884_s0 = inlined_call_operand.vmem [shape: f32[16,32], index: 0, kind: input, shape index: {}]   ;;  %s885_s1 = inlined_call_operand.vmem [shape: f32[1,32], index: 1, kind: input, shape index: {}]   ;;  %s886_s2 = inlined_call_operand.vmem [shape: bf16[1,32,256], index: 2, kind: input, shape index: {}]   ;;  %s887_s3 = inlined_call_operand.vmem [shape: bf16[1,128,32], index: 3, kind: input, shape index: {}]   ;;  %s888_s4 = inlined_call_operand.hbm [shape: f32[16,32], index: 4, kind: output, shape index: {}]  }
   0x1   :  { %11 = vsyncpa [#allocation5 + $0x1], 0  ;;  %s730_s15 = smov 0   ;;  %s732_s16 = smov 0  }
   0x2   :  { %s734_s17 = smov 0   ;;  %s736_s18 = smov 0  }
   0x3   :  { %s738_s19 = smov 0   ;;  %s740_s20 = smov 0  }
   0x4 LB: > { %s488_s21 = sadd.s32 4294967295, %s702_s20   ;;  %s489_s22 = sadd.s32 4294967294, %s702_s20   ;;  %s702_s20 = sphi %s740_s20, %s17_s20   ;;  %s698_s19 = sphi %s738_s19, %s895_s19   ;;  %s694_s18 = sphi %s736_s18, %s894_s18   ;;  %s690_s17 = sphi %s734_s17, %s893_s17   ;;  %s686_s16 = sphi %s732_s16, %s892_s16   ;;  %s682_s15 = sphi %s730_s15, %s891_s15  }
   0x5   : > { %s29_s23 = sadd.s32 1, %s698_s19  ;;  %s125_s24 = sadd.s32 1, %s690_s17 }
   0x6   : > { %p31_p0 = scmp.ge.s32.totalorder %s29_s23, 2  ;;  %p135_p1 = scmp.ne.s32.totalorder %s690_s17, %s686_s16 }
   0x7   : > { %p136_p2 = scmp.eq.s32.totalorder %s488_s21, 1  ;;  %p141_p3 = scmp.ne.s32.totalorder %s686_s16, %s682_s15 }
   0x8   : > { %s897_s23 = smov (%p31_p0, %s29_s23), 0  ;;  %p142_p5 = scmp.eq.s32.totalorder %s489_s22, 1 }
   0x9   : > { %p770_p4 = por %p136_p2, %p135_p1  ;;  %s122_s26 = ssub.s32 %s698_s19, %s897_s23 }
   0xa   : > { %p492_p6 = scmp.ge.s32.totalorder %s702_s20, 1  ;;  %p123_p7 = scmp.eq.s32.totalorder %s122_s26, 0 }
   0xb   : > { %p777_p8 = por %p142_p5, %p141_p3  ;;  %p176_p9 = scmp.lt.s32.totalorder %s702_s20, 3 }
   0xc   : > { %s783_s28 = scalar_select %p123_p7, %s690_s17, %s125_s24  }
   0xd   : > { %p177_p10 = pnand %p492_p6, %p176_p9 }
   0xe   : > { %p201_p11 = scmp.lt.s32.totalorder (!%p177_p10), %s694_s18, 1  ;;  %s198_s10 = sand.u32 (!%p177_p10), 1, %s686_s16  }
   0xf   : > { %180 = sbr.rel (%p177_p10) target bundleno = 476 (0x1dc), region = 36  ;;  %s493_s11 = sshll.u32 (!%p177_p10), %s198_s10, 3 }
  0x10   : > { %s546_s12 = sshll.u32 (!%p177_p10), %s694_s18, 3  ;;  %s200_s22 = scalar_lea.vmem (!%p177_p10), [#allocation4], %s493_s11 }
  0x11   : > { %s412_s21 = scalar_lea.hbm (!%p177_p10), %s888_s4, %s546_s12  ;;  %s414_s24 = sshll.u32 (!%p177_p10), %s200_s22, 4  ;;  %s415_s24 = int_to_ptr.vmem [resolvable:$true] %s414_s24 }
  0x12   : > { %s416_s26 = sshll.u32 (!%p177_p10), %s412_s21, 4  ;;  %s417_s26 = int_to_ptr.hbm [resolvable:$true] %s416_s26 }
  0x14   : > { %s202_s29 = scalar_select %p201_p11, %s694_s18, 1  ;;  %vm212_vm0 = vcmask 261120   ;;  %v704_v3 = vmov 32.0   ;;  %v505_v9 = vld [vmem:[%s886_s2 + $0x10] sm:$0xf]  ;;  %v560_v25 = vld [vmem:[%s887_s3 + $0x38] sm:$0xff] }
  0x15   : > { %618 = vrcp.f32 %v704_v3  ;;  %v552_v10 = vld [vmem:[%s886_s2 + $0x14] sm:$0xf0]  ;;  %v551_v12 = vld [vmem:[%s886_s2 + $0x14] sm:$0xf]  ;;  %v507_v13 = vld [vmem:[%s886_s2 + $0x18] sm:$0xf0]  ;;  %381 = vmatpush.bf16.msra.mxu2 %v560_v25 }
  0x16   : > { %s494_s30 = sshll.u32 %s202_s29, 3  ;;  %v506_v11 = vor.u32 %v552_v10, %v505_v9  ;;  %v510_v14 = vor.u32 %v551_v12, %v507_v13  ;;  %v497_v15 = vld [vmem:[%s886_s2] sm:$0xf]  ;;  %v550_v16 = vld [vmem:[%s886_s2 + $0x4] sm:$0xf0]  ;;  %v559_v26 = vld [vmem:[%s887_s3 + $0x30] sm:$0xff] }
  0x17   : > { %s204_s7 = scalar_lea.vmem %s884_s0, %s494_s30  ;;  %v549_v17 = vld [vmem:[%s886_s2 + $0x4] sm:$0xf]  ;;  %v498_v19 = vor.u32 %v550_v16, %v497_v15  ;;  %v499_v20 = vld [vmem:[%s886_s2 + $0x8] sm:$0xf0]  ;;  %v617_v33 = vld [vmem:[%s885_s1] ss:$0 sm:$0xff] }
  0x18   : > { %v210_v0 = vld [vmem:[%s204_s7] sm:$0xff]  ;;  %302 = vmatpush.bf16.msra.mxu0 %v506_v11  ;;  %315 = vmatpush.bf16.msra.mxu1 %v510_v14  ;;  %v502_v21 = vor.u32 %v549_v17, %v499_v20  ;;  %vm242_vm5 = vcmask 257024   ;;  %v558_v39 = vld [vmem:[%s887_s3 + $0x28] sm:$0xff]  ;;  %v556_v41 = vld [vmem:[%s887_s3 + $0x18] sm:$0xff]  ;;  %s402_s29 = scalar_lea.sflag [#allocation5], %s198_s10  ;;  %s638_s30 = sshra.s32 %s417_s26, 4  ;;  %s639_s30 = int_to_ptr.hbm [resolvable:$true] %s638_s30 }
  0x19   : > { %v211_v1 = vmul.f32 %v210_v0, %v210_v0  ;;  %244 = vst.msk [vmem:[#allocation2] sm:$0xff] %vm212_vm0, %v210_v0  ;;  %382 = vmatpush.bf16.msra.mxu2 %v559_v26  ;;  %v557_v40 = vld [vmem:[%s887_s3 + $0x20] sm:$0xff]  ;;  %v555_v42 = vld [vmem:[%s887_s3 + $0x10] sm:$0xff]  ;;  %v554_v43 = vld [vmem:[%s887_s3 + $0x8] sm:$0xff]  ;;  %s640_s18 = scalar_lea.hbm %s639_s30, 8  ;;  %s644_s7 = scalar_lea.hbm %s888_s4, 16 }
  0x1a   : > { %v553_v44 = vld [vmem:[%s887_s3] sm:$0xff]  ;;  %p641_p12 = scmp.ne.s32.totalorder %s639_s30, %s640_s18  ;;  %p645_p1 = scmp.lt.s32.totalorder %s639_s30, %s888_s4 }
  0x1b   : > { %v213_v2 = vsel %vm212_vm0, %v211_v1, 0.0  ;;  %v619_v4 = vpop.eup %618  ;;  %p646_p2 = scmp.lt.s32.totalorder %s644_s7, %s640_s18 }
  0x1c   : > { %214 = vadd.xlane.f32.xlu0 %v213_v2  ;;  %v217_v5 = vmul.f32 32.0, %v619_v4  ;;  %vm221_vm1 = vweird.f32 %v619_v4  ;;  %303 = vmatpush.bf16.msra.mxu0 %v498_v19  ;;  %p642_p13 = pnand %p641_p12, %p770_p4 }
  0x1d   : > { %316 = vmatpush.bf16.msra.mxu1 %v502_v21  ;;  %383 = vmatpush.bf16.msra.mxu2 %v558_v39  ;;  %p647_p3 = por %p646_p2, %p645_p1 }
  0x1e   : > { %v218_v6 = vsub.f32 1.0, %v217_v5  ;;  %p643_p0 = pneg %p642_p13 }
  0x20   : > { %v219_v7 = vmul.f32 %v619_v4, %v218_v6  ;;  %v332_v59 = vld [vmem:[#allocation2] sm:$0xff]  ;;  %p648_p5 = pnand %p647_p3, %p643_p0 }
  0x21   : > { %384 = vmatpush.bf16.msra.mxu2 %v557_v40 }
  0x22   : > { %v220_v8 = vadd.f32 %v619_v4, %v219_v7 }
  0x24   : > { %v222_v18 = vsel %vm221_vm1, %v619_v4, %v220_v8 }
  0x25   : > { %385 = vmatpush.bf16.msra.mxu2 %v556_v41 }
  0x29   : > { %386 = vmatpush.bf16.msra.mxu2 %v555_v42 }
  0x2d   : > { %387 = vmatpush.bf16.msra.mxu2 %v554_v43 }
  0x31   : > { %388 = vmatpush.bf16.msra.mxu2 %v553_v44 }
  0x8f   : > { %v215_v22 = vpop.xlane.xlu0 %214 }
  0x90   : > { %v223_v23 = vmul.f32 %v222_v18, %v215_v22 }
  0x92   : > { %v224_v24 = vadd.f32 1e-06, %v223_v23 }
  0x94   : > { %620 = vrsqrt.f32 %v224_v24  ;;  %vm231_vm3 = vweird.f32 %v224_v24 }
  0x9a   : > { %v621_v27 = vpop.eup %620 }
  0x9b   : > { %v226_v28 = vmul.f32 %v621_v27, %v224_v24  ;;  %vm232_vm2 = vweird.f32 %v621_v27 }
  0x9c   : > { %vm233_vm4 = vmor %vm231_vm3, %vm232_vm2 }
  0x9d   : > { %v227_v29 = vmul.f32 %v621_v27, %v226_v28 }
  0x9f   : > { %v228_v30 = vmul.f32 0.5, %v227_v29 }
  0xa1   : > { %v229_v31 = vsub.f32 1.5, %v228_v30 }
  0xa3   : > { %v230_v32 = vmul.f32 %v621_v27, %v229_v31 }
  0xa5   : > { %v234_v34 = vsel %vm233_vm4, %v621_v27, %v230_v32 }
  0xa6   : > { %v235_v35 = vmul.f32 %v234_v34, %v210_v0 }
  0xa8   : > { %v240_v36 = vmul.f32 %v617_v33, %v235_v35 }
  0xaa   : > { %v241_v37 = vpack.c.bf16 %v240_v36, %v240_v36 }
  0xac   : > { %243 = vst.msk [vmem:[#allocation3] sm:$0xf] %vm242_vm5, %v241_v37 }
  0xb3   : > { %v245_v38 = vld [vmem:[#allocation3] sm:$0xf] }
  0xb4   : > { %511 = vmatmul.msk.bf16.vlgmr.msra.gmra.mxu0 %vm212_vm0, %v245_v38  ;;  %512 = vmatmul.msk.bf16.vlgmr.msra.gmra.mxu1 %vm212_vm0, %v245_v38 }
 0x131   : > { %v305_v45 = vpop.f32.mrf.mxu0  ;;  %v318_v46 = vpop.f32.mrf.mxu1 }
 0x132   : > { %v322_v47 = vmul.f32 %v305_v45, %v305_v45 }
 0x134   : > { %v323_v48 = vmul.f32 0.035677407, %v322_v47 }
 0x136   : > { %v324_v49 = vadd.f32 0.7978846, %v323_v48 }
 0x138   : > { %v325_v50 = vmul.f32 %v324_v49, %v305_v45 }
 0x139   : > { %v307_v51 = vpop.f32.mrf.mxu0  ;;  %v320_v52 = vpop.f32.mrf.mxu1 }
 0x13a   : > { %622 = vtanh.f32 %v325_v50 }
 0x140   : > { %v623_v53 = vpop.eup %622 }
 0x141   : > { %v327_v54 = vmul.f32 0.5, %v623_v53 }
 0x143   : > { %v328_v55 = vadd.f32 0.5, %v327_v54 }
 0x145   : > { %v329_v56 = vmul.f32 %v328_v55, %v305_v45 }
 0x147   : > { %v330_v57 = vmul.f32 %v329_v56, %v318_v46 }
 0x149   : > { %v331_v58 = vpack.c.bf16 %v330_v57, %v330_v57 }
 0x14b   : > { %389 = vmatmul.bf16.vlgmr.msra.gmra.mxu2 %v331_v58 }
 0x1ce   : > { %v390_v60 = vpop.f32.mrf.mxu2 }
 0x1cf   : > { %v394_v61 = vadd.f32 %v390_v60, %v332_v59 }
 0x1d1   : > { %395 = vst.msk [vmem:[#allocation2] sm:$0xff] %vm212_vm0, %v394_v61 }
 0x1d6   : > { %v392_v62 = vpop.f32.mrf.mxu2 }
 0x1d8   : > { %v399_v63 = vld [vmem:[#allocation2] sm:$0xff] }
 0x1d9   : > { %400 = vst.msk [vmem:[%s200_s22] sm:$0xff] %vm212_vm0, %v399_v63 }
 0x1da   : > { %651 = shalt.err (!%p648_p5)
}
 0x1db   : > { %561 = dma.vmem_to_hbm [thread:$0]  (%p770_p4), %s415_s24, 128, %s417_s26, %s402_s29  }
 0x1dc PF: > { %p567_p6 = scmp.ge.s32.totalorder %s702_s20, 2  ;;  %s428_s10 = sand.u32 1, %s682_s15  }
 0x1dd   : > { %s429_s11 = scalar_lea.sflag [#allocation5], %s428_s10 }
 0x1de   : > { %p564_p7 = pnand %p567_p6, %p777_p8 }
 0x1e0   : > { %p565_p9 = pneg %p564_p7 }
 0x1e2   : > { %677 = dma.done.wait (%p565_p9), %s429_s11, 128  }
 0x1e3   : > { %679 = vsyncadd (%p565_p9), %s429_s11, 4294967168  ;;  %s17_s20 = sadd.s32 1, %s702_s20   ;;  %s891_s15 = smov %s686_s16 }
 0x1e4   : > { %p14_p10 = scmp.ge.s32.totalorder %s17_s20, 4   ;;  %s892_s16 = smov %s690_s17 }
 0x1e5   : > { %s893_s17 = smov %s783_s28  ;;  %s894_s18 = smov %s698_s19 }
 0x1e6   : > { %s895_s19 = smov %s897_s23  ;;  %16 = sbr.rel (!%p14_p10) target bundleno = 4 (0x4), region = 81 }
 0x1eb   :  { %435 = vsyncpa [#allocation5], 1 }
 0x1ec   :  { %437 = vsyncpa [#allocation5 + $0x1], 1 }

</bundles_post_ra>
